<compile_context>
chip_gen: v7x
topology: tpu7x:2x2x1
jax: 0.10.0
libtpu: 0.0.40
codegen_flags: <defaults>
</compile_context>

<pallas_src>
import jax
import jax.numpy as jnp
from jax.experimental import pallas as pl
from jax.experimental.pallas import tpu as pltpu

_LANE = 128
_SUBLANE = 8


def _diag_gaussian_kernel(x_ref, w_ref, b_ref, logstd_ref, mean_ref, logstd_out_ref):
    # action_mean: one MXU push + full-vreg VPU add (bias already pre-broadcast
    # to the full (b_rows, n_pad) slab, so no cross-sublane broadcast here).
    mean_ref[...] = (
        jnp.dot(x_ref[...], w_ref[...], preferred_element_type=jnp.float32)
        + b_ref[...]
    ).astype(mean_ref.dtype)
    # action_logstd = AddBias(zeros): the pre-broadcast constant slab is simply
    # written out.  Fused here so the wrapper does not launch a separate
    # broadcast op; full-width unmasked vst (lane-dense, n_pad = 128k).
    logstd_out_ref[...] = logstd_ref[...]


def prepare_params(w, b, logstd, batch, dtype=jnp.float32):
    """One-time parameter prep to a lane-dense, sublane-aligned layout.

    w:      (num_outputs, num_inputs)  PyTorch nn.Linear weight layout.
    b:      (num_outputs,)             Linear bias.
    logstd: (num_outputs,)             AddBias bias (zeros at init).
    batch:  expected batch size (rows padded up to a multiple of 8).

    Returns:
      w_t_pad     (num_inputs, n_pad)  transposed + zero-padded weight
      b_pad       (b_rows, n_pad)      bias pre-broadcast to full slab
      logstd_pad  (b_rows, n_pad)      logstd pre-broadcast to full slab
    All pinned to `dtype` so no implicit promotion happens in-kernel.
    """
    num_outputs, num_inputs = w.shape
    n_pad = max(_LANE, ((num_outputs + _LANE - 1) // _LANE) * _LANE)
    b_rows = ((batch + _SUBLANE - 1) // _SUBLANE) * _SUBLANE

    w_t_pad = (
        jnp.zeros((num_inputs, n_pad), dtype).at[:, :num_outputs].set(w.T.astype(dtype))
    )
    b_pad = (
        jnp.zeros((b_rows, n_pad), dtype)
        .at[:, :num_outputs]
        .set(jnp.broadcast_to(b.astype(dtype)[None, :], (b_rows, num_outputs)))
    )
    logstd_pad = (
        jnp.zeros((b_rows, n_pad), dtype)
        .at[:, :num_outputs]
        .set(jnp.broadcast_to(logstd.astype(dtype)[None, :], (b_rows, num_outputs)))
    )
    return w_t_pad, b_pad, logstd_pad


def diag_gaussian_forward(x, w_t_pad, b_pad, logstd_pad, num_outputs):
    """x: (B, num_inputs). Returns (action_mean, action_logstd), each (B, num_outputs)."""
    B, num_inputs = x.shape
    b_rows, n_pad = b_pad.shape

    # Callers should keep B % 8 == 0 (the demo does) so this pad never runs.
    x_in = x
    if B != b_rows:
        x_in = jnp.zeros((b_rows, num_inputs), x.dtype).at[:B].set(x)

    mean_pad, logstd_out_pad = pl.pallas_call(
        _diag_gaussian_kernel,
        out_shape=(
            jax.ShapeDtypeStruct((b_rows, n_pad), x.dtype),
            jax.ShapeDtypeStruct((b_rows, n_pad), x.dtype),
        ),
        in_specs=[
            pl.BlockSpec(memory_space=pltpu.MemorySpace.VMEM),
            pl.BlockSpec(memory_space=pltpu.MemorySpace.VMEM),
            pl.BlockSpec(memory_space=pltpu.MemorySpace.VMEM),
            pl.BlockSpec(memory_space=pltpu.MemorySpace.VMEM),
        ],
        out_specs=(
            pl.BlockSpec(memory_space=pltpu.MemorySpace.VMEM),
            pl.BlockSpec(memory_space=pltpu.MemorySpace.VMEM),
        ),
    )(x_in, w_t_pad, b_pad, logstd_pad)

    # Single slice per output back to the logical shape forward() must return.
    action_mean = mean_pad[:B, :num_outputs]
    action_logstd = logstd_out_pad[:B, :num_outputs]
    return action_mean, action_logstd


def reference_forward(x, w, b, logstd):
    mean = x @ w.T + b.reshape(1, -1)
    return mean, jnp.broadcast_to(logstd.reshape(1, -1), mean.shape)


if __name__ == "__main__":
    num_inputs = 32
    num_outputs = 8
    batch = 8  # multiple of 8 -> no wrapper-side row padding

    key = jax.random.PRNGKey(0)
    k_x, k_w, k_b = jax.random.split(key, 3)

    # PyTorch Linear shapes: weight (num_outputs, num_inputs), bias (num_outputs,);
    # logstd (AddBias bias) initialized to zeros.
    x = jax.random.normal(k_x, (batch, num_inputs), dtype=jnp.float32)
    w = jax.random.normal(k_w, (num_outputs, num_inputs), dtype=jnp.float32) * 0.1
    b = jax.random.normal(k_b, (num_outputs,), dtype=jnp.float32) * 0.1
    logstd = jnp.zeros((num_outputs,), dtype=jnp.float32)

    w_t_pad, b_pad, logstd_pad = prepare_params(w, b, logstd, batch, dtype=x.dtype)

    action_mean, action_logstd = diag_gaussian_forward(
        x, w_t_pad, b_pad, logstd_pad, num_outputs
    )
    action_mean = jax.block_until_ready(action_mean)
    action_logstd = jax.block_until_ready(action_logstd)

    ref_mean, ref_logstd = reference_forward(x, w, b, logstd)
    assert action_mean.shape == (batch, num_outputs)
    assert action_logstd.shape == (batch, num_outputs)
    assert jnp.allclose(action_mean, ref_mean, atol=1e-5, rtol=1e-5)
    assert jnp.allclose(action_logstd, ref_logstd, atol=1e-6, rtol=1e-6)

    print("KERNEL_OK")
</pallas_src>

<mosaic_0001>
module attributes {stable_mosaic.version = 11 : i64} {
  func.func @_diag_gaussian_kernel(%arg0: memref<8x32xf32, #tpu.memory_space<vmem>>, %arg1: memref<32x128xf32, #tpu.memory_space<vmem>>, %arg2: memref<8x128xf32, #tpu.memory_space<vmem>>, %arg3: memref<8x128xf32, #tpu.memory_space<vmem>>, %arg4: memref<8x128xf32, #tpu.memory_space<vmem>>, %arg5: memref<8x128xf32, #tpu.memory_space<vmem>>) attributes {dimension_semantics = [], scalar_prefetch = 0 : i64, scratch_operands = 0 : i64, tpu.core_type = #tpu.core_type<tc>} {
    %c0 = arith.constant 0 : index
    %c0_0 = arith.constant 0 : index
    %0 = vector.load %arg0[%c0, %c0_0] : memref<8x32xf32, #tpu.memory_space<vmem>>, vector<8x32xf32>
    %c0_1 = arith.constant 0 : index
    %c0_2 = arith.constant 0 : index
    %1 = vector.load %arg1[%c0_1, %c0_2] : memref<32x128xf32, #tpu.memory_space<vmem>>, vector<32x128xf32>
    %cst = arith.constant dense<0.000000e+00> : vector<8x128xf32>
    %2 = tpu.matmul %0, %1, %cst {dimension_numbers = #tpu.dot_dimension_numbers<[1], [0], [0], [1], [0, 0, 1, 1], [], []>} : vector<8x32xf32>, vector<32x128xf32>, vector<8x128xf32> -> vector<8x128xf32>
    %c0_3 = arith.constant 0 : index
    %c0_4 = arith.constant 0 : index
    %3 = vector.load %arg2[%c0_3, %c0_4] : memref<8x128xf32, #tpu.memory_space<vmem>>, vector<8x128xf32>
    %4 = arith.addf %2, %3 : vector<8x128xf32>
    %c0_5 = arith.constant 0 : index
    %c0_6 = arith.constant 0 : index
    %5 = vector.load %arg4[%c0_5, %c0_6] : memref<8x128xf32, #tpu.memory_space<vmem>>, vector<8x128xf32>
    tpu.vector_store %arg4[%c0_5, %c0_6], %4 {strides = array<i32>} : memref<8x128xf32, #tpu.memory_space<vmem>>, vector<8x128xf32>,
    %c0_7 = arith.constant 0 : index
    %c0_8 = arith.constant 0 : index
    %6 = vector.load %arg3[%c0_7, %c0_8] : memref<8x128xf32, #tpu.memory_space<vmem>>, vector<8x128xf32>
    %c0_9 = arith.constant 0 : index
    %c0_10 = arith.constant 0 : index
    %7 = vector.load %arg5[%c0_9, %c0_10] : memref<8x128xf32, #tpu.memory_space<vmem>>, vector<8x128xf32>
    tpu.vector_store %arg5[%c0_9, %c0_10], %6 {strides = array<i32>} : memref<8x128xf32, #tpu.memory_space<vmem>>, vector<8x128xf32>,
    return
  }
}

</mosaic_0001>

<bundles_post_ra>
// kernel: tpu_custom_call.1
= control target key start
LH: loop header
LB: loop body
LE: loop exit
PB: predicated region body
PF: predicated region fallthrough
CT: control target
= control target key end

     0   :  { %11 = vsyncpa [#allocation3], 0  ;;  %s425_s0 = inlined_call_operand.hbm [shape: f32[8,32], index: 0, kind: input, shape index: {}]   ;;  %s426_s1 = inlined_call_operand.hbm [shape: f32[32,128], index: 1, kind: input, shape index: {}]   ;;  %s427_s2 = inlined_call_operand.hbm [shape: f32[8,128], index: 2, kind: input, shape index: {}]   ;;  %s428_s3 = inlined_call_operand.vmem [shape: f32[8,128], index: 3, kind: input, shape index: {}]   ;;  %s429_s4 = inlined_call_operand.hbm [shape: f32[8,128], index: 4, kind: output, shape index: {0}]   ;;  %s430_s5 = inlined_call_operand.hbm [shape: f32[8,128], index: 5, kind: output, shape index: {1}]  }
   0x1   :  { %12 = vsyncpa [#allocation6], 0 }
   0x2   :  { %13 = vsyncpa [#allocation4], 0 }
   0x3   :  { %14 = vsyncpa [#allocation10], 0  ;;  %s322_s18 = smov [#allocation5]   ;;  %s204_s22 = scalar_lea.hbm %s426_s1, 512 }
   0x4   :  { %s30_s19 = sshll.u32 %s322_s18, 4  ;;  %p205_p0 = scmp.ne.s32.totalorder %s426_s1, %s204_s22  ;;  %s31_s19 = int_to_ptr.vmem [resolvable:$true] %s30_s19 }
   0x5   :  { %p208_p1 = scmp.lt.u32.totalorder %s204_s22, %s426_s1 }
   0x7   :  { %p210_p2 = pnand %p208_p1, %p205_p0 }
   0x9   :  { %213 = shalt.err (!%p210_p2)
}
   0xa   :  { %s214_s27 = scalar_lea.vmem %s31_s19, 512  ;;  %p219_p4 = scmp.lt.s32.totalorder %s31_s19, %s31_s19 }
   0xb   :  { %p215_p3 = scmp.ne.s32.totalorder %s31_s19, %s214_s27  ;;  %p220_p5 = scmp.lt.s32.totalorder %s214_s27, %s214_s27 }
   0xd   :  { %p221_p6 = por %p220_p5, %p219_p4 }
   0xf   :  { %p222_p7 = pnand %p221_p6, %p215_p3 }
  0x11   :  { %225 = shalt.err (!%p222_p7)
}
  0x12   :  { %s323_s28 = smov 128   ;;  %s324_s29 = smov 8  }
  0x13   :  { %36 = dma.hbm_to_vmem [thread:$0]  %s426_s1, 512, %s31_s19, [#allocation6], %s323_s28, %s323_s28, %s324_s29  }
  0x14   :  { %s325_s7 = smov [#allocation2]   ;;  %s326_s9 = smov [#allocation7]  }
  0x15   :  { %s21_s8 = sshll.u32 %s325_s7, 4  ;;  %s43_s10 = sshll.u32 %s326_s9, 4  ;;  %s22_s8 = int_to_ptr.vmem [resolvable:$true] %s21_s8  ;;  %s44_s10 = int_to_ptr.vmem [resolvable:$true] %s43_s10 }
  0x16   :  { %s226_s13 = scalar_lea.hbm %s425_s0, 128 }
  0x17   :  { %p227_p8 = scmp.ne.s32.totalorder %s425_s0, %s226_s13  ;;  %p230_p9 = scmp.lt.u32.totalorder %s226_s13, %s425_s0 }
  0x19   :  { %p232_p10 = pnand %p230_p9, %p227_p8 }
  0x1b   :  { %235 = shalt.err (!%p232_p10)
}
  0x1c   :  { %s236_s1 = scalar_lea.vmem %s22_s8, 128  ;;  %p241_p12 = scmp.lt.s32.totalorder %s22_s8, %s22_s8 }
  0x1d   :  { %p237_p11 = scmp.ne.s32.totalorder %s22_s8, %s236_s1  ;;  %p242_p13 = scmp.lt.s32.totalorder %s236_s1, %s236_s1 }
  0x1f   :  { %p243_p0 = por %p242_p13, %p241_p12 }
  0x21   :  { %p244_p1 = pnand %p243_p0, %p237_p11 }
  0x23   :  { %247 = shalt.err (!%p244_p1)
}
  0x24   :  { %24 = dma.hbm_to_vmem [thread:$0]  %s425_s0, 128, %s22_s8, [#allocation3]  }
  0x25   :  { %s248_s22 = scalar_lea.hbm %s427_s2, 128 }
  0x26   :  { %p249_p2 = scmp.ne.s32.totalorder %s427_s2, %s248_s22  ;;  %p252_p3 = scmp.lt.u32.totalorder %s248_s22, %s427_s2 }
  0x28   :  { %p254_p4 = pnand %p252_p3, %p249_p2 }
  0x2a   :  { %257 = shalt.err (!%p254_p4)
}
  0x2b   :  { %s258_s27 = scalar_lea.vmem %s44_s10, 128  ;;  %p263_p6 = scmp.lt.s32.totalorder %s44_s10, %s44_s10 }
  0x2c   :  { %p259_p5 = scmp.ne.s32.totalorder %s44_s10, %s258_s27  ;;  %p264_p7 = scmp.lt.s32.totalorder %s258_s27, %s258_s27 }
  0x2e   :  { %p265_p8 = por %p264_p7, %p263_p6 }
  0x30   :  { %p266_p9 = pnand %p265_p8, %p259_p5 }
  0x32   :  { %269 = shalt.err (!%p266_p9)
}
  0x33   :  { %46 = dma.hbm_to_vmem [thread:$0]  %s427_s2, 128, %s44_s10, [#allocation6]  }
  0x34   :  { %314 = dma.done.wait [#allocation3], 128  }
  0x35   :  { %315 = vsyncadd [#allocation3], 4294967168 }
  0x36   :  { %316 = dma.done.wait [#allocation6], 640  }
  0x37   :  { %317 = vsyncadd [#allocation6], 4294966656  ;;  %v327_v0 = vmov 0.0|0.0   ;;  %vm328_vm0 = vmmov 0   ;;  %v329_v1 = vmov 0.0   ;;  %v59_v2 = vld [vmem:[#allocation5] sm:$0xff] }
  0x38   :  { %188 = vmatprep.subr.bf16.mxu0 %v327_v0  ;;  %185 = vmatprep.mubr.msk.f32.mxu0 %vm328_vm0, %v329_v1  ;;  %v60_v3 = vld [vmem:[#allocation5 + $0x8] sm:$0xff]  ;;  %v61_v4 = vld [vmem:[#allocation5 + $0x10] sm:$0xff]  ;;  %v62_v6 = vld [vmem:[#allocation5 + $0x18] sm:$0xff]  ;;  %vm64_vm1 = vcmask 261120   ;;  %s330_s30 = smov [#allocation9]  }
  0x39   :  { %v189_v5 = vpack.c.bf16 %v60_v3, %v59_v2  ;;  %v192_v7 = vpack.c.bf16 %v62_v6, %v61_v4  ;;  %v58_v8 = vld [vmem:[#allocation2] sm:$0xff]  ;;  %s157_s6 = sshll.u32 %s330_s30, 4  ;;  %s158_s6 = int_to_ptr.vmem [resolvable:$true] %s157_s6 }
  0x3a   :  { %v139_v9 = vld [vmem:[%s428_s3] sm:$0xff]  ;;  %s270_s7 = scalar_lea.vmem %s158_s6, 128  ;;  %p275_p11 = scmp.lt.s32.totalorder %s158_s6, %s158_s6 }
  0x3b   :  { %190 = vmatpush3.bf16.msra.mxu0 %v189_v5  ;;  %140 = vst [vmem:[#allocation9] sm:$0xff] %v139_v9  ;;  %p271_p10 = scmp.ne.s32.totalorder %s158_s6, %s270_s7  ;;  %p276_p12 = scmp.lt.s32.totalorder %s270_s7, %s270_s7 }
  0x3c   :  { %191 = vmatprep.subr.bf16.mxu0 %v327_v0 }
  0x3d   :  { %p277_p13 = por %p276_p12, %p275_p11 }
  0x3f   :  { %193 = vmatpush3.bf16.msra.mxu0 %v192_v7  ;;  %p278_p0 = pnand %p277_p13, %p271_p10 }
  0x42   :  { %186 = vmatmul.mubr.msk.f32.vlgmr.msra.gmra.mrb[0].mxu0 %vm64_vm1, %v58_v8 }
  0x43   :  { %281 = shalt.err (!%p278_p0)
}
  0x44   :  { %s282_s10 = scalar_lea.hbm %s430_s5, 128 }
  0x45   :  { %p283_p1 = scmp.ne.s32.totalorder %s430_s5, %s282_s10  ;;  %p286_p2 = scmp.lt.u32.totalorder %s282_s10, %s430_s5 }
  0x47   :  { %p288_p3 = pnand %p286_p2, %p283_p1 }
  0x49   :  { %291 = shalt.err (!%p288_p3)
}
  0x4a   :  { %160 = dma.vmem_to_hbm [thread:$0]  %s158_s6, 128, %s430_s5, [#allocation10]   ;;  %v63_v10 = vld [vmem:[#allocation7] sm:$0xff] }
  0x4b   :  { %s331_s16 = smov [#allocation8]  }
  0x4c   :  { %s147_s17 = sshll.u32 %s331_s16, 4  ;;  %s148_s17 = int_to_ptr.vmem [resolvable:$true] %s147_s17 }
  0x4d   :  { %s292_s1 = scalar_lea.vmem %s148_s17, 128  ;;  %p297_p5 = scmp.lt.s32.totalorder %s148_s17, %s148_s17 }
  0x4e   :  { %p293_p4 = scmp.ne.s32.totalorder %s148_s17, %s292_s1  ;;  %p298_p6 = scmp.lt.s32.totalorder %s292_s1, %s292_s1 }
  0x50   :  { %p299_p7 = por %p298_p6, %p297_p5 }
  0x52   :  { %p300_p8 = pnand %p299_p7, %p293_p4 }
 0x115   :  { %v134_v11 = vpop.f32.mrb[0].mxu0 }
 0x116   :  { %v135_v12 = vadd.f32 %v134_v11, %v63_v10  ;;  %v187_v13 = vpop.f32.mrb[1].mxu0 }
 0x118   :  { %138 = vst [vmem:[#allocation8] sm:$0xff] %v135_v12 }
 0x119   :  { %303 = shalt.err (!%p300_p8)
}
 0x11a   :  { %s304_s20 = scalar_lea.hbm %s429_s4, 128 }
 0x11b   :  { %p305_p9 = scmp.ne.s32.totalorder %s429_s4, %s304_s20  ;;  %p308_p10 = scmp.lt.u32.totalorder %s304_s20, %s429_s4 }
 0x11d   :  { %p310_p11 = pnand %p308_p10, %p305_p9 }
 0x11f   :  { %313 = shalt.err (!%p310_p11)
}
 0x120   :  { %150 = dma.vmem_to_hbm [thread:$0]  %s148_s17, 128, %s429_s4, [#allocation4]  }
 0x121   :  { %318 = dma.done.wait [#allocation4], 128  }
 0x122   :  { %319 = vsyncadd [#allocation4], 4294967168 }
 0x123   :  { %320 = dma.done.wait [#allocation10], 128  }
 0x124   :  { %321 = vsyncadd [#allocation10], 4294967168 }
 0x125   :  { %167 = vsyncpa [#allocation3], 1 }
 0x126   :  { %168 = vsyncpa [#allocation6], 1 }
 0x127   :  { %169 = vsyncpa [#allocation4], 1 }
 0x128   :  { %170 = vsyncpa [#allocation10], 1 }

</bundles_post_ra>
